<compile_context>
chip_gen: v5e
topology: v5e:2x2
jax: 0.10.0
libtpu: 0.0.40
codegen_flags: <defaults>
</compile_context>

<pallas_src>
import jax
import jax.numpy as jnp
from jax.experimental import pallas as pl
from jax.experimental.pallas import tpu as pltpu


def _dnm_kernel(x_ref, w_ref, shift_ref, o_ref):
    # x_ref:     (1, C_in, THW)  bf16 activations (spatial on the lane axis)
    # w_ref:     (C_out, C_in)   bf16 1x1-conv weight with BN scale folded in
    # shift_ref: (C_out, 1)      f32 folded BN shift (broadcast along lanes)
    # o_ref:     (1, C_out, THW) f32 output
    y = jnp.dot(w_ref[...], x_ref[0], preferred_element_type=jnp.float32)
    y = y + shift_ref[...]
    o_ref[0] = jnp.maximum(y, 0.0).astype(o_ref.dtype)


def dnm_block(x_nchw, w2, gamma2, beta2, mean2, var2, eps=1e-5, tile_hw=1024):
    """Effective forward of DnmBlock: relu(bn2(conv2_1x1(x))).

    x_nchw: [N, C_in, H, W] float32
    w2:     [C_out, C_in]   (nn.Conv2d(in_c, out_c, 1) weight squeezed)
    """
    N, C_in, H, W = x_nchw.shape
    C_out = w2.shape[0]
    HW = H * W

    # Fold BatchNorm (eval semantics): scale into the weight, shift kept apart.
    inv_std = 1.0 / jnp.sqrt(var2 + eps)
    scale = gamma2 * inv_std                                  # (C_out,)
    w_eff = (w2 * scale[:, None]).astype(jnp.bfloat16)        # (C_out, C_in)
    shift = (beta2 - mean2 * scale).reshape(C_out, 1).astype(jnp.float32)

    # NCHW consumed directly: flatten spatial only (contiguous, free reshape);
    # bf16 halves the dominant activation read on this HBM-bound kernel.
    x_flat = x_nchw.reshape(N, C_in, HW).astype(jnp.bfloat16)

    # Lane-align the spatial axis; pad only when N*H*W is ragged vs 128 lanes.
    HW_pad = pl.cdiv(HW, 128) * 128
    if HW_pad != HW:
        x_flat = jnp.pad(x_flat, ((0, 0), (0, 0), (0, HW_pad - HW)))

    # Large spatial tiles (sweepable); partial last tile handled by cdiv grid.
    tile_hw = min(tile_hw, HW_pad)
    grid = (N, pl.cdiv(HW_pad, tile_hw))

    cost = pl.CostEstimate(
        flops=2 * N * HW_pad * C_in * C_out,
        transcendentals=0,
        bytes_accessed=(x_flat.size * 2            # bf16 activation read
                        + w_eff.size * 2           # bf16 weight read
                        + N * C_out * HW_pad * 4), # f32 output write
    )

    out = pl.pallas_call(
        _dnm_kernel,
        out_shape=jax.ShapeDtypeStruct((N, C_out, HW_pad), x_nchw.dtype),
        grid_spec=pltpu.PrefetchScalarGridSpec(
            num_scalar_prefetch=0,
            grid=grid,
            in_specs=[
                pl.BlockSpec((1, C_in, tile_hw), lambda n, s: (n, 0, s)),
                pl.BlockSpec((C_out, C_in), lambda n, s: (0, 0)),
                pl.BlockSpec((C_out, 1), lambda n, s: (0, 0)),
            ],
            out_specs=pl.BlockSpec((1, C_out, tile_hw), lambda n, s: (n, 0, s)),
        ),
        compiler_params=pltpu.CompilerParams(
            dimension_semantics=("parallel", "parallel")),
        cost_estimate=cost,
    )(x_flat, w_eff, shift)

    if HW_pad != HW:
        out = out[:, :, :HW]
    return out.reshape(N, C_out, H, W)


def _reference(x_nchw, w2, gamma2, beta2, mean2, var2, eps=1e-5):
    # Pure-JAX f32 reference of the same effective forward.
    y = jnp.einsum("nchw,oc->nohw", x_nchw, w2)
    scale = (gamma2 / jnp.sqrt(var2 + eps))[None, :, None, None]
    shift = (beta2 - mean2 * gamma2 / jnp.sqrt(var2 + eps))[None, :, None, None]
    return jnp.maximum(y * scale + shift, 0.0)


if __name__ == "__main__":
    # Small shapes consistent with the module (default in_c=out_c=64).
    N, C_in, C_out, H, W = 2, 64, 64, 16, 16

    key = jax.random.PRNGKey(0)
    k_x, k_w1, k_w2, k_g, k_b, k_m, k_v = jax.random.split(key, 7)

    x = jax.random.normal(k_x, (N, C_in, H, W), dtype=jnp.float32)

    # conv1 (depthwise 3x3) weights exist in the module but are dead code in
    # forward(); allocated here only to mirror __init__ shapes.
    w1_dead = jax.random.normal(k_w1, (C_in, 1, 3, 3), dtype=jnp.float32) * 0.1

    # conv2: 1x1 pointwise, no bias -> weight [C_out, C_in, 1, 1] squeezed.
    w2 = jax.random.normal(k_w2, (C_out, C_in), dtype=jnp.float32) * 0.1

    # BatchNorm2d(out_c) parameters / running stats (deterministic init).
    gamma2 = 1.0 + 0.1 * jax.random.normal(k_g, (C_out,), dtype=jnp.float32)
    beta2 = 0.1 * jax.random.normal(k_b, (C_out,), dtype=jnp.float32)
    mean2 = 0.05 * jax.random.normal(k_m, (C_out,), dtype=jnp.float32)
    var2 = 1.0 + 0.1 * jax.nn.softplus(
        jax.random.normal(k_v, (C_out,), dtype=jnp.float32))

    out = jax.block_until_ready(dnm_block(x, w2, gamma2, beta2, mean2, var2))
    ref = _reference(x, w2, gamma2, beta2, mean2, var2)

    assert out.shape == (N, C_out, H, W)
    # bf16 matmul inputs (f32 accumulation) -> tolerance loosened vs f32 ref.
    assert jnp.allclose(out, ref, atol=5e-2, rtol=5e-2), "mismatch vs reference"

    print("KERNEL_OK")
</pallas_src>

<mosaic_0001>
module attributes {stable_mosaic.version = 11 : i64} {
  func.func @_dnm_kernel(%arg0: i32, %arg1: i32, %arg2: memref<1x64x256xbf16, #tpu.memory_space<vmem>>, %arg3: memref<64x64xbf16, #tpu.memory_space<vmem>>, %arg4: memref<64x1xf32, #tpu.memory_space<vmem>>, %arg5: memref<1x64x256xf32, #tpu.memory_space<vmem>>) attributes {dimension_semantics = [#tpu.dimension_semantics<parallel>, #tpu.dimension_semantics<parallel>], iteration_bounds = array<i64: 2, 1>, scalar_prefetch = 0 : i64, scratch_operands = 0 : i64, tpu.core_type = #tpu.core_type<tc>, window_params = [{transform_indices = @transform_0, window_bounds = array<i64: 1, 64, 256>}, {pipeline_mode = #tpu.pipeline_mode<synchronous>, transform_indices = @transform_1, window_bounds = array<i64: 64, 64>}, {pipeline_mode = #tpu.pipeline_mode<synchronous>, transform_indices = @transform_2, window_bounds = array<i64: 64, 1>}, {transform_indices = @transform_3, window_bounds = array<i64: 1, 64, 256>}]} {
    %c0 = arith.constant 0 : index
    %c0_0 = arith.constant 0 : index
    %0 = vector.load %arg3[%c0, %c0_0] : memref<64x64xbf16, #tpu.memory_space<vmem>>, vector<64x64xbf16>
    %c0_1 = arith.constant 0 : index
    %c0_2 = arith.constant 0 : index
    %c0_3 = arith.constant 0 : index
    %1 = vector.load %arg2[%c0_1, %c0_2, %c0_3] : memref<1x64x256xbf16, #tpu.memory_space<vmem>>, vector<1x64x256xbf16>
    %2 = vector.shape_cast %1 : vector<1x64x256xbf16> to vector<64x256xbf16>
    %cst = arith.constant dense<0.000000e+00> : vector<64x256xf32>
    %3 = tpu.matmul %0, %2, %cst {dimension_numbers = #tpu.dot_dimension_numbers<[1], [0], [0], [1], [0, 0, 1, 1], [], []>} : vector<64x64xbf16>, vector<64x256xbf16>, vector<64x256xf32> -> vector<64x256xf32>
    %c0_4 = arith.constant 0 : index
    %c0_5 = arith.constant 0 : index
    %4 = vector.load %arg4[%c0_4, %c0_5] : memref<64x1xf32, #tpu.memory_space<vmem>>, vector<64x1xf32>
    %5 = vector.broadcast %4 : vector<64x1xf32> to vector<64x256xf32>
    %6 = arith.addf %3, %5 : vector<64x256xf32>
    %cst_6 = arith.constant 0.000000e+00 : f32
    %7 = vector.broadcast %cst_6 : f32 to vector<64x256xf32>
    %8 = arith.maximumf %6, %7 : vector<64x256xf32>
    %c0_7 = arith.constant 0 : index
    %c0_8 = arith.constant 0 : index
    %c0_9 = arith.constant 0 : index
    %9 = vector.load %arg5[%c0_7, %c0_8, %c0_9] : memref<1x64x256xf32, #tpu.memory_space<vmem>>, vector<1x64x256xf32>
    %10 = vector.shape_cast %9 : vector<1x64x256xf32> to vector<64x256xf32>
    %11 = vector.shape_cast %8 : vector<64x256xf32> to vector<1x64x256xf32>
    tpu.vector_store %arg5[%c0_7, %c0_8, %c0_9], %11 {strides = array<i32>} : memref<1x64x256xf32, #tpu.memory_space<vmem>>, vector<1x64x256xf32>,
    return
  }
  func.func @transform_0(%arg0: i32, %arg1: i32) -> (i32, i32, i32) {
    %c0_i32 = arith.constant 0 : i32
    %c0_i32_0 = arith.constant 0 : i32
    return %arg0, %c0_i32, %arg1 : i32, i32, i32
  }
  func.func @transform_1(%arg0: i32, %arg1: i32) -> (i32, i32) {
    %c0_i32 = arith.constant 0 : i32
    %c0_i32_0 = arith.constant 0 : i32
    %c0_i32_1 = arith.constant 0 : i32
    return %c0_i32, %c0_i32_0 : i32, i32
  }
  func.func @transform_2(%arg0: i32, %arg1: i32) -> (i32, i32) {
    %c0_i32 = arith.constant 0 : i32
    %c0_i32_0 = arith.constant 0 : i32
    %c0_i32_1 = arith.constant 0 : i32
    return %c0_i32, %c0_i32_0 : i32, i32
  }
  func.func @transform_3(%arg0: i32, %arg1: i32) -> (i32, i32, i32) {
    %c0_i32 = arith.constant 0 : i32
    %c0_i32_0 = arith.constant 0 : i32
    return %arg0, %c0_i32, %arg1 : i32, i32, i32
  }
}

</mosaic_0001>

<bundles_post_ra>
// kernel: tpu_custom_call.1
= control target key start
LH: loop header
LB: loop body
LE: loop exit
PB: predicated region body
PF: predicated region fallthrough
CT: control target
= control target key end

     0   :  { %8 = vsyncpa [#allocation3], 0  ;;  %s1048_s0 = inlined_call_operand.hbm [shape: bf16[2,64,256], index: 0, kind: input, shape index: {}]   ;;  %s1049_s1 = inlined_call_operand.vmem [shape: bf16[64,64], index: 1, kind: input, shape index: {}]   ;;  %s1050_s2 = inlined_call_operand.vmem [shape: f32[64,1], index: 2, kind: input, shape index: {}]   ;;  %s1051_s3 = inlined_call_operand.hbm [shape: f32[2,64,256], index: 3, kind: output, shape index: {}]  }
   0x1   :  { %10 = vsyncpa [#allocation3 + $0x1], 0 }
   0x2   :  { %11 = vsyncpa [#allocation4], 0 }
   0x3   :  { %13 = vsyncpa [#allocation4 + $0x1], 0  ;;  %s846_s12 = smov 0   ;;  %s848_s13 = smov 0  }
   0x4   :  { %s850_s14 = smov 0   ;;  %s852_s15 = smov 0  }
   0x5   :  { %s854_s16 = smov 0   ;;  %s856_s17 = smov 0  }
   0x6 LB: > { %s544_s18 = sadd.s32 4294967295, %s819_s17   ;;  %s545_s19 = sadd.s32 4294967294, %s819_s17   ;;  %s819_s17 = sphi %s856_s17, %s19_s17   ;;  %s815_s16 = sphi %s854_s16, %s1060_s16   ;;  %s811_s15 = sphi %s852_s15, %s1059_s15   ;;  %s807_s14 = sphi %s850_s14, %s1058_s14   ;;  %s803_s13 = sphi %s848_s13, %s1057_s13   ;;  %s799_s12 = sphi %s846_s12, %s1056_s12  }
   0x7   : > { %s31_s20 = sadd.s32 1, %s815_s16  ;;  %s40_s21 = sadd.s32 1, %s807_s14 }
   0x8   : > { %p33_p0 = scmp.ge.s32.totalorder %s31_s20, 2  ;;  %p47_p1 = scmp.ne.s32.totalorder %s807_s14, %s803_s13 }
   0x9   : > { %p48_p2 = scmp.eq.s32.totalorder %s819_s17, 0  ;;  %p53_p3 = scmp.ne.s32.totalorder %s803_s13, %s799_s12 }
   0xa   : > { %s1062_s20 = smov (%p33_p0, %s31_s20), 0  ;;  %p54_p5 = scmp.eq.s32.totalorder %s544_s18, 0 }
   0xb   : > { %p887_p4 = por %p48_p2, %p47_p1  ;;  %s35_s23 = ssub.s32 %s815_s16, %s1062_s20 }
   0xc   : > { %p121_p6 = scmp.eq.s32.totalorder %s544_s18, 1  ;;  %p38_p7 = scmp.eq.s32.totalorder %s35_s23, 0 }
   0xd   : > { %p893_p8 = por %p54_p5, %p53_p3  ;;  %p127_p10 = scmp.eq.s32.totalorder %s545_s19, 1 }
   0xe   : > { %p897_p9 = por %p121_p6, %p47_p1  ;;  %p547_p12 = scmp.ge.s32.totalorder %s819_s17, 2 }
   0xf   : > { %s902_s26 = scalar_select %p38_p7, %s807_s14, %s40_s21  }
  0x10   : > { %p904_p11 = por %p127_p10, %p53_p3  ;;  %p649_p13 = scmp.lt.s32.totalorder %s819_s17, 2 }
  0x11   : > { %s153_s28 = sand.u32 1, %s807_s14   ;;  %s615_s30 = sshll.u32 %s815_s16, 6 }
  0x12   : > { %s548_s29 = sshll.u32 %s153_s28, 6  ;;  %s164_s6 = scalar_lea.hbm %s1048_s0, %s615_s30 }
  0x13   : > { %s157_s7 = scalar_lea.vmem [#allocation2], %s548_s29  ;;  %s165_s9 = sshll.u32 %s164_s6, 4  ;;  %s166_s9 = int_to_ptr.hbm [resolvable:$true] %s165_s9 }
  0x14   : > { %s167_s8 = sshll.u32 %s157_s7, 4  ;;  %p642_p0 = pnand %p649_p13, %p887_p4  ;;  %s168_s8 = int_to_ptr.vmem [resolvable:$true] %s167_s8 }
  0x15   : > { %p551_p1 = scmp.ge.s32.totalorder %s819_s17, 1  ;;  %s154_s10 = scalar_lea.sflag [#allocation3], %s153_s28 }
  0x16   : > { %s821_s11 = smov 128   ;;  %s822_s18 = smov 8  }
  0x17   : > { %644 = dma.hbm_to_vmem [thread:$0]  (!%p642_p0), %s166_s9, 1024, %s168_s8, %s154_s10, %s821_s11, %s821_s11, %s822_s18  }
  0x18   : > { %p175_p2 = scmp.lt.s32.totalorder %s819_s17, 3 }
  0x1a   : > { %p176_p3 = pnand %p551_p1, %p175_p2 }
  0x1b   : > { %s920_s19 = sand.u32 (!%p176_p3), 1, %s803_s13  }
  0x1c   : > { %179 = sbr.rel (%p176_p3) target bundleno = 217 (0xd9), region = 32  ;;  %s552_s21 = sshll.u32 (!%p176_p3), %s920_s19, 6 }
  0x1d   : > { %s182_s23 = scalar_lea.sflag (!%p176_p3), [#allocation3], %s920_s19  ;;  %s924_s29 = scalar_lea.vmem (!%p176_p3), [#allocation2], %s552_s21 }
  0x21   : > { %790 = dma.done.wait (%p893_p8), %s182_s23, 1024  }
  0x22   : > { %792 = vsyncadd (%p893_p8), %s182_s23, 4294966272  ;;  %v823_v0 = vmov 0   ;;  %v596_v1 = vld [vmem:[%s924_s29 + $0x30] sm:$0xf]  ;;  %v627_v2 = vld [vmem:[%s924_s29 + $0x34] sm:$0xf0] }
  0x23   : > { %705 = vset.pattern.permute.xlu1 %v823_v0  ;;  %704 = vset.pattern.permute.xlu0 %v823_v0  ;;  %v626_v3 = vld [vmem:[%s924_s29 + $0x34] sm:$0xf]  ;;  %v597_v4 = vor.u32 %v627_v2, %v596_v1  ;;  %v598_v5 = vld [vmem:[%s924_s29 + $0x38] sm:$0xf0]  ;;  %v588_v6 = vld [vmem:[%s924_s29 + $0x20] sm:$0xf] }
  0x24   : > { %706 = vset.pattern.permute.xlu2 %v823_v0  ;;  %v625_v7 = vld [vmem:[%s924_s29 + $0x24] sm:$0xf0]  ;;  %v601_v8 = vor.u32 %v626_v3, %v598_v5  ;;  %v624_v9 = vld [vmem:[%s924_s29 + $0x24] sm:$0xf]  ;;  %v590_v10 = vld [vmem:[%s924_s29 + $0x28] sm:$0xf0] }
  0x25   : > { %353 = vmatpush.bf16.msra.mxu0 %v597_v4  ;;  %629 = vmatpush.bf16.msra.mxu2 %v597_v4  ;;  %v589_v11 = vor.u32 %v625_v7, %v588_v6  ;;  %v593_v12 = vor.u32 %v624_v9, %v590_v10  ;;  %v580_v13 = vld [vmem:[%s924_s29 + $0x10] sm:$0xf]  ;;  %v623_v14 = vld [vmem:[%s924_s29 + $0x14] sm:$0xf0]  ;;  %v622_v15 = vld [vmem:[%s924_s29 + $0x14] sm:$0xf] }
  0x26   : > { %382 = vmatpush.bf16.msra.mxu1 %v601_v8  ;;  %633 = vmatpush.bf16.msra.mxu3 %v601_v8  ;;  %v582_v16 = vld [vmem:[%s924_s29 + $0x18] sm:$0xf0]  ;;  %v230_v17 = vld [vmem:[%s1050_s2 + $0x10] sm:$0xff]  ;;  %v228_v18 = vld [vmem:[%s1050_s2] sm:$0xff]  ;;  %v581_v19 = vor.u32 %v623_v14, %v580_v13  ;;  %vm336_vm0 = vcmask 523264   ;;  %s553_s8 = sshll.u32 %s920_s19, 7 }
  0x27   : > { %v585_v20 = vor.u32 %v622_v15, %v582_v16  ;;  %v572_v21 = vld [vmem:[%s924_s29] sm:$0xf]  ;;  %v621_v22 = vld [vmem:[%s924_s29 + $0x4] sm:$0xf0]  ;;  %v620_v24 = vld [vmem:[%s924_s29 + $0x4] sm:$0xf]  ;;  %248 = vperm.xlu1 %705, %v230_v17   ;;  %238 = vperm.xlu0 %704, %v228_v18  }
  0x28   : > { %v232_v23 = vld [vmem:[%s1050_s2 + $0x20] sm:$0xff]  ;;  %v574_v25 = vld [vmem:[%s924_s29 + $0x8] sm:$0xf0]  ;;  %v573_v26 = vor.u32 %v621_v22, %v572_v21  ;;  %v618_v29 = vld [vmem:[%s1049_s1 + $0x10] sm:$0xff]  ;;  %s991_s9 = scalar_lea.vmem [#allocation5], %s553_s8  ;;  %s628_s10 = sshll.u32 %s811_s15, 7 }
  0x29   : > { %354 = vmatpush.bf16.msra.mxu0 %v589_v11  ;;  %630 = vmatpush.bf16.msra.mxu2 %v589_v11  ;;  %v577_v27 = vor.u32 %v620_v24, %v574_v25  ;;  %v616_v28 = vld [vmem:[%s1049_s1] sm:$0xff]  ;;  %v231_v30 = vld [vmem:[%s1050_s2 + $0x18] sm:$0xff]  ;;  %v229_v31 = vld [vmem:[%s1050_s2 + $0x8] sm:$0xff]  ;;  %s453_s21 = scalar_lea.hbm %s1051_s3, %s628_s10  ;;  %s454_s15 = sshll.u32 %s991_s9, 4  ;;  %s455_s15 = int_to_ptr.vmem [resolvable:$true] %s454_s15 }
  0x2a   : > { %383 = vmatpush.bf16.msra.mxu1 %v593_v12  ;;  %634 = vmatpush.bf16.msra.mxu3 %v593_v12  ;;  %v233_v32 = vld [vmem:[%s1050_s2 + $0x28] sm:$0xff]  ;;  %v235_v33 = vld [vmem:[%s1050_s2 + $0x38] sm:$0xff]  ;;  %v234_v34 = vld [vmem:[%s1050_s2 + $0x30] sm:$0xff]  ;;  %s456_s23 = sshll.u32 %s453_s21, 4  ;;  %s440_s29 = scalar_lea.sflag [#allocation4], %s920_s19  ;;  %s457_s23 = int_to_ptr.hbm [resolvable:$true] %s456_s23 }
  0x2b   : > { %258 = vperm.xlu2 %706, %v232_v23   ;;  %v617_v35 = vld [vmem:[%s1049_s1 + $0x8] sm:$0xff]  ;;  %v619_v36 = vld [vmem:[%s1049_s1 + $0x18] sm:$0xff]  ;;  %s751_s22 = sshra.s32 %s457_s23, 4  ;;  %s757_s4 = scalar_lea.hbm %s1051_s3, 256  ;;  %s752_s22 = int_to_ptr.hbm [resolvable:$true] %s751_s22 }
  0x2c   : > { %s753_s24 = scalar_lea.hbm %s752_s22, 128  ;;  %p758_p7 = scmp.lt.s32.totalorder %s752_s22, %s1051_s3 }
  0x2d   : > { %355 = vmatpush.bf16.msra.mxu0 %v581_v19  ;;  %631 = vmatpush.bf16.msra.mxu2 %v581_v19  ;;  %p754_p4 = scmp.ne.s32.totalorder %s752_s22, %s753_s24  ;;  %p759_p8 = scmp.lt.s32.totalorder %s757_s4, %s753_s24 }
  0x2e   : > { %384 = vmatpush.bf16.msra.mxu1 %v585_v20  ;;  %635 = vmatpush.bf16.msra.mxu3 %v585_v20 }
  0x2f   : > { %253 = vperm.xlu1 %705, %v231_v30   ;;  %243 = vperm.xlu0 %704, %v229_v31   ;;  %p755_p5 = pnand %p754_p4, %p897_p9  ;;  %p760_p10 = por %p759_p8, %p758_p7 }
  0x31   : > { %356 = vmatpush.bf16.msra.mxu0 %v573_v26  ;;  %632 = vmatpush.bf16.msra.mxu2 %v573_v26  ;;  %p756_p6 = pneg %p755_p5 }
  0x32   : > { %385 = vmatpush.bf16.msra.mxu1 %v577_v27  ;;  %636 = vmatpush.bf16.msra.mxu3 %v577_v27 }
  0x33   : > { %263 = vperm.xlu2 %706, %v233_v32   ;;  %p761_p13 = pnand %p760_p10, %p756_p6 }
  0x34   : > { %602 = vmatmul.msk.bf16.vlgmr.msra.gmra.mxu0 %vm336_vm0, %v616_v28  ;;  %604 = vmatmul.msk.bf16.vlgmr.msra.gmra.mxu2 %vm336_vm0, %v618_v29 }
  0x35   : > { %606 = vmatmul.msk.bf16.vlgmr.msra.gmra.mxu1 %vm336_vm0, %v616_v28  ;;  %608 = vmatmul.msk.bf16.vlgmr.msra.gmra.mxu3 %vm336_vm0, %v618_v29 }
  0x37   : > { %273 = vperm.xlu1 %705, %v235_v33   ;;  %268 = vperm.xlu0 %704, %v234_v34  }
  0x44   : > { %603 = vmatmul.msk.bf16.gmra.mxu0 %vm336_vm0, %v617_v35  ;;  %605 = vmatmul.msk.bf16.gmra.mxu2 %vm336_vm0, %v619_v36 }
  0x45   : > { %607 = vmatmul.msk.bf16.gmra.mxu1 %vm336_vm0, %v617_v35  ;;  %609 = vmatmul.msk.bf16.gmra.mxu3 %vm336_vm0, %v619_v36 }
  0x85   : > { %v259_v42 = vpop.permute.xlu2 %258 }
  0x8d   : > { %v264_v59 = vpop.permute.xlu2 %263 }
  0x99   : > { %v239_v37 = vpop.permute.xlu0 %238  ;;  %v249_v54 = vpop.permute.xlu1 %248 }
  0xa1   : > { %v244_v48 = vpop.permute.xlu0 %243  ;;  %v254_v7 = vpop.permute.xlu1 %253 }
  0xa9   : > { %v269_v9 = vpop.permute.xlu0 %268  ;;  %v274_v22 = vpop.permute.xlu1 %273 }
  0xb1   : > { %v358_v38 = vpop.f32.mrf.mxu0 }
  0xb2   : > { %v359_v39 = vadd.f32 %v358_v38, %v239_v37  ;;  %v387_v40 = vpop.f32.mrf.mxu1 }
  0xb3   : > { %v388_v41 = vadd.f32 %v387_v40, %v239_v37 }
  0xb4   : > { %v407_v43 = vmax.f32 %v359_v39, 0.0 }
  0xb5   : > { %v408_v44 = vmax.f32 %v388_v41, 0.0 }
  0xb6   : > { %423 = vst [vmem:[%s991_s9] sm:$0xff] %v407_v43 }
  0xb7   : > { %424 = vst [vmem:[%s991_s9 + $0x8] sm:$0xff] %v408_v44  ;;  %v368_v45 = vpop.f32.mrf.mxu2 }
  0xb8   : > { %v369_v46 = vadd.f32 %v368_v45, %v259_v42  ;;  %v397_v47 = vpop.f32.mrf.mxu3 }
  0xb9   : > { %v398_v49 = vadd.f32 %v397_v47, %v259_v42  ;;  %v360_v50 = vpop.f32.mrf.mxu0 }
  0xba   : > { %v415_v51 = vmax.f32 %v369_v46, 0.0  ;;  %v361_v52 = vadd.f32 %v360_v50, %v244_v48  ;;  %v389_v53 = vpop.f32.mrf.mxu1 }
  0xbb   : > { %v416_v55 = vmax.f32 %v398_v49, 0.0  ;;  %v390_v56 = vadd.f32 %v389_v53, %v244_v48 }
  0xbc   : > { %431 = vst [vmem:[%s991_s9 + $0x40] sm:$0xff] %v415_v51  ;;  %v409_v57 = vmax.f32 %v361_v52, 0.0 }
  0xbd   : > { %432 = vst [vmem:[%s991_s9 + $0x48] sm:$0xff] %v416_v55  ;;  %v410_v58 = vmax.f32 %v390_v56, 0.0 }
  0xbe   : > { %425 = vst [vmem:[%s991_s9 + $0x10] sm:$0xff] %v409_v57 }
  0xbf   : > { %426 = vst [vmem:[%s991_s9 + $0x18] sm:$0xff] %v410_v58  ;;  %v370_v60 = vpop.f32.mrf.mxu2 }
  0xc0   : > { %v371_v61 = vadd.f32 %v370_v60, %v264_v59  ;;  %v399_v62 = vpop.f32.mrf.mxu3 }
  0xc1   : > { %v400_v63 = vadd.f32 %v399_v62, %v264_v59  ;;  %v363_v0 = vpop.f32.mrf.mxu0 }
  0xc2   : > { %v417_v1 = vmax.f32 %v371_v61, 0.0  ;;  %v364_v2 = vadd.f32 %v363_v0, %v249_v54  ;;  %v392_v3 = vpop.f32.mrf.mxu1 }
  0xc3   : > { %v418_v4 = vmax.f32 %v400_v63, 0.0  ;;  %v393_v5 = vadd.f32 %v392_v3, %v249_v54 }
  0xc4   : > { %433 = vst [vmem:[%s991_s9 + $0x50] sm:$0xff] %v417_v1  ;;  %v411_v6 = vmax.f32 %v364_v2, 0.0 }
  0xc5   : > { %434 = vst [vmem:[%s991_s9 + $0x58] sm:$0xff] %v418_v4  ;;  %v412_v8 = vmax.f32 %v393_v5, 0.0 }
  0xc6   : > { %427 = vst [vmem:[%s991_s9 + $0x20] sm:$0xff] %v411_v6 }
  0xc7   : > { %428 = vst [vmem:[%s991_s9 + $0x28] sm:$0xff] %v412_v8  ;;  %v373_v10 = vpop.f32.mrf.mxu2 }
  0xc8   : > { %v374_v11 = vadd.f32 %v373_v10, %v269_v9  ;;  %v402_v12 = vpop.f32.mrf.mxu3 }
  0xc9   : > { %v403_v13 = vadd.f32 %v402_v12, %v269_v9  ;;  %v365_v14 = vpop.f32.mrf.mxu0 }
  0xca   : > { %v419_v15 = vmax.f32 %v374_v11, 0.0  ;;  %v366_v16 = vadd.f32 %v365_v14, %v254_v7  ;;  %v394_v17 = vpop.f32.mrf.mxu1 }
  0xcb   : > { %v420_v18 = vmax.f32 %v403_v13, 0.0  ;;  %v395_v19 = vadd.f32 %v394_v17, %v254_v7 }
  0xcc   : > { %435 = vst [vmem:[%s991_s9 + $0x60] sm:$0xff] %v419_v15  ;;  %v413_v20 = vmax.f32 %v366_v16, 0.0 }
  0xcd   : > { %436 = vst [vmem:[%s991_s9 + $0x68] sm:$0xff] %v420_v18  ;;  %v414_v21 = vmax.f32 %v395_v19, 0.0 }
  0xce   : > { %429 = vst [vmem:[%s991_s9 + $0x30] sm:$0xff] %v413_v20 }
  0xcf   : > { %430 = vst [vmem:[%s991_s9 + $0x38] sm:$0xff] %v414_v21  ;;  %v375_v23 = vpop.f32.mrf.mxu2 }
  0xd0   : > { %v376_v24 = vadd.f32 %v375_v23, %v274_v22  ;;  %v404_v25 = vpop.f32.mrf.mxu3 }
  0xd1   : > { %v405_v26 = vadd.f32 %v404_v25, %v274_v22 }
  0xd2   : > { %v421_v27 = vmax.f32 %v376_v24, 0.0 }
  0xd3   : > { %v422_v28 = vmax.f32 %v405_v26, 0.0 }
  0xd4   : > { %437 = vst [vmem:[%s991_s9 + $0x70] sm:$0xff] %v421_v27 }
  0xd5   : > { %438 = vst [vmem:[%s991_s9 + $0x78] sm:$0xff] %v422_v28 }
  0xd6   : > { %764 = shalt.err (!%p761_p13)
}
  0xd7   : > { %s824_s19 = smov 256   ;;  %s825_s7 = smov 16  }
  0xd8   : > { %639 = dma.vmem_to_hbm [thread:$0]  (%p897_p9), %s455_s15, 2048, %s457_s23, %s440_s29, %s824_s19, %s824_s19, %s825_s7  }
  0xd9 PF: > { %s471_s8 = sand.u32 1, %s799_s12   ;;  %p646_p0 = pnand %p547_p12, %p904_p11 }
  0xda   : > { %s472_s9 = scalar_lea.sflag [#allocation4], %s471_s8 }
  0xdb   : > { %p647_p1 = pneg %p646_p0 }
  0xdd   : > { %794 = dma.done.wait (%p647_p1), %s472_s9, 2048  }
  0xde   : > { %796 = vsyncadd (%p647_p1), %s472_s9, 4294965248  ;;  %s19_s17 = sadd.s32 1, %s819_s17   ;;  %s1056_s12 = smov %s803_s13 }
  0xdf   : > { %p16_p2 = scmp.ge.s32.totalorder %s19_s17, 4   ;;  %s1057_s13 = smov %s807_s14 }
  0xe0   : > { %s1058_s14 = smov %s902_s26  ;;  %s1059_s15 = smov %s815_s16 }
  0xe1   : > { %s1060_s16 = smov %s1062_s20  ;;  %18 = sbr.rel (!%p16_p2) target bundleno = 6 (0x6), region = 77 }
  0xe6   :  { %478 = vsyncpa [#allocation3], 1 }
  0xe7   :  { %480 = vsyncpa [#allocation3 + $0x1], 1 }
  0xe8   :  { %481 = vsyncpa [#allocation4], 1 }
  0xe9   :  { %483 = vsyncpa [#allocation4 + $0x1], 1 }

</bundles_post_ra>
